<compile_context>
chip_gen: v7x
topology: tpu7x:2x2x1
jax: 0.10.0
libtpu: 0.0.40
codegen_flags: <defaults>
</compile_context>

<pallas_src>
import jax
import jax.numpy as jnp
from jax.experimental import pallas as pl
from jax.experimental.pallas import tpu as pltpu


def _linear_kernel(x_ref, w_ref, o_ref):
    # (tile_b, K) @ (K, N) -> (tile_b, N) on the MXU, f32 accumulation.
    o_ref[...] = jnp.dot(
        x_ref[...], w_ref[...], preferred_element_type=jnp.float32
    )


def _cost(batch, in_features, n_actions):
    return pl.CostEstimate(
        flops=2 * batch * in_features * n_actions,
        bytes_accessed=4 * (batch * in_features
                            + in_features * n_actions
                            + batch * n_actions),
        transcendentals=0,
    )


# Below this, a single whole-array VMEM invocation (no grid, no pipeline
# prologue/epilogue) is strictly cheaper.  1024 rows x 32 feats f32 = 128 KiB.
_SMALL_BATCH = 1024
# Cap the batch tile so double-buffered x tiles (1 MiB each) stay far under
# even v5e's 16 MiB scoped-VMEM default.
_MAX_TILE_B = 8192


def _choose_tile_b(batch):
    # Aim for >= 2 grid steps (v7x megacore) and a multiple-of-8 row tile.
    tile = min(_MAX_TILE_B, -(-batch // 2))
    tile = max(8, (tile // 8) * 8)
    return tile


def net_forward(x, weight):
    """Q-network forward.

    x:      (batch, in_features) float32
    weight: (n_actions, in_features) float32  (PyTorch nn.Linear layout)
    returns (batch, n_actions) float32  ==  x @ weight.T
    """
    batch, in_features = x.shape
    n_actions = weight.shape[0]
    # One-time tiny (512 B) transpose in the wrapper -> MXU-native (K, N).
    w_t = weight.T
    out_shape = jax.ShapeDtypeStruct((batch, n_actions), jnp.float32)
    cost = _cost(batch, in_features, n_actions)

    if batch <= _SMALL_BATCH:
        # Small-batch (act-step) path: single shot, everything resident in VMEM.
        return pl.pallas_call(
            _linear_kernel,
            out_shape=out_shape,
            in_specs=[
                pl.BlockSpec(memory_space=pltpu.MemorySpace.VMEM),
                pl.BlockSpec(memory_space=pltpu.MemorySpace.VMEM),
            ],
            out_specs=pl.BlockSpec(memory_space=pltpu.MemorySpace.VMEM),
            cost_estimate=cost,
        )(x, w_t)

    # Large-batch path: pipelined batch grid; cdiv grid handles the non-multiple
    # tail with a partially-masked final tile (row-independent matmul => safe).
    tile_b = _choose_tile_b(batch)
    grid = (pl.cdiv(batch, tile_b),)
    return pl.pallas_call(
        _linear_kernel,
        out_shape=out_shape,
        grid=grid,
        in_specs=[
            pl.BlockSpec((tile_b, in_features), lambda i: (i, 0)),
            pl.BlockSpec((in_features, n_actions), lambda i: (0, 0)),
        ],
        out_specs=pl.BlockSpec((tile_b, n_actions), lambda i: (i, 0)),
        compiler_params=pltpu.CompilerParams(
            dimension_semantics=("parallel",)
        ),
        cost_estimate=cost,
    )(x, w_t)


if __name__ == "__main__":
    key = jax.random.PRNGKey(0)
    k_x, k_w = jax.random.split(key)

    batch = 8
    in_features = 32
    n_actions = 4  # action_space.n

    x = jax.random.normal(k_x, (batch, in_features), dtype=jnp.float32)
    # Deterministic synthetic weight, PyTorch layout (n_actions, in_features).
    bound = 1.0 / (in_features ** 0.5)
    weight = jax.random.uniform(
        k_w, (n_actions, in_features), dtype=jnp.float32,
        minval=-bound, maxval=bound,
    )

    # Small-batch (single-shot) path.
    out = net_forward(x, weight)
    jax.block_until_ready(out)
    ref = x @ weight.T
    assert out.shape == (batch, n_actions)
    assert jnp.allclose(out, ref, atol=1e-5, rtol=1e-5)

    # Large-batch gridded path, exact-multiple case (grid of 2 parallel steps).
    xb = jax.random.normal(k_x, (4096, in_features), dtype=jnp.float32)
    outb = net_forward(xb, weight)
    jax.block_until_ready(outb)
    assert jnp.allclose(outb, xb @ weight.T, atol=1e-4, rtol=1e-4)

    # Large-batch gridded path, non-multiple batch (partial tail tile).
    xc = jax.random.normal(k_w, (3000, in_features), dtype=jnp.float32)
    outc = net_forward(xc, weight)
    jax.block_until_ready(outc)
    assert jnp.allclose(outc, xc @ weight.T, atol=1e-4, rtol=1e-4)

    print("KERNEL_OK")
</pallas_src>

<mosaic_0001>
module attributes {stable_mosaic.version = 11 : i64} {
  func.func @_linear_kernel(%arg0: memref<8x32xf32, #tpu.memory_space<vmem>>, %arg1: memref<32x4xf32, #tpu.memory_space<vmem>>, %arg2: memref<8x4xf32, #tpu.memory_space<vmem>>) attributes {dimension_semantics = [], scalar_prefetch = 0 : i64, scratch_operands = 0 : i64, tpu.core_type = #tpu.core_type<tc>} {
    %c0 = arith.constant 0 : index
    %c0_0 = arith.constant 0 : index
    %0 = vector.load %arg0[%c0, %c0_0] : memref<8x32xf32, #tpu.memory_space<vmem>>, vector<8x32xf32>
    %c0_1 = arith.constant 0 : index
    %c0_2 = arith.constant 0 : index
    %1 = vector.load %arg1[%c0_1, %c0_2] : memref<32x4xf32, #tpu.memory_space<vmem>>, vector<32x4xf32>
    %cst = arith.constant dense<0.000000e+00> : vector<8x4xf32>
    %2 = tpu.matmul %0, %1, %cst {dimension_numbers = #tpu.dot_dimension_numbers<[1], [0], [0], [1], [0, 0, 1, 1], [], []>} : vector<8x32xf32>, vector<32x4xf32>, vector<8x4xf32> -> vector<8x4xf32>
    %c0_3 = arith.constant 0 : index
    %c0_4 = arith.constant 0 : index
    %3 = vector.load %arg2[%c0_3, %c0_4] : memref<8x4xf32, #tpu.memory_space<vmem>>, vector<8x4xf32>
    tpu.vector_store %arg2[%c0_3, %c0_4], %2 {strides = array<i32>} : memref<8x4xf32, #tpu.memory_space<vmem>>, vector<8x4xf32>,
    return
  }
}

</mosaic_0001>

<bundles_post_ra>
// kernel: tpu_custom_call.1
= control target key start
LH: loop header
LB: loop body
LE: loop exit
PB: predicated region body
PF: predicated region fallthrough
CT: control target
= control target key end

     0   :  { %v122_v0 = vmov 0.0|0.0   ;;  %vm123_vm0 = vmmov 0   ;;  %v124_v4 = vmov 0.0   ;;  %vm16_vm1 = vcmask 261120   ;;  %s158_s1 = inlined_call_operand.vmem [shape: f32[32,4], index: 1, kind: input, shape index: {}]   ;;  %s159_s0 = inlined_call_operand.vmem [shape: f32[8,32], index: 0, kind: input, shape index: {}]   ;;  %s160_s2 = inlined_call_operand.vmem [shape: f32[8,4], index: 2, kind: output, shape index: {}]  }
   0x1   :  { %113 = vmatprep.subr.bf16.mxu0 %v122_v0  ;;  %v12_v1 = vld [vmem:[%s158_s1] sm:$0xff]  ;;  %v13_v2 = vld [vmem:[%s158_s1 + $0x8] sm:$0xff]  ;;  %v14_v3 = vld [vmem:[%s158_s1 + $0x10] sm:$0xff]  ;;  %110 = vmatprep.mubr.msk.f32.mxu0 %vm123_vm0, %v124_v4  ;;  %vm90_vm2 = vcmask 31744  }
   0x2   :  { %v114_v5 = vpack.c.bf16 %v13_v2, %v12_v1  ;;  %v15_v6 = vld [vmem:[%s158_s1 + $0x18] sm:$0xff]  ;;  %v11_v8 = vld [vmem:[%s159_s0] sm:$0xff] }
   0x3   :  { %v117_v7 = vpack.c.bf16 %v15_v6, %v14_v3 }
   0x4   :  { %115 = vmatpush3.bf16.msra.mxu0 %v114_v5 }
   0x5   :  { %116 = vmatprep.subr.bf16.mxu0 %v122_v0 }
   0x8   :  { %118 = vmatpush3.bf16.msra.mxu0 %v117_v7 }
   0xb   :  { %111 = vmatmul.mubr.msk.f32.vlgmr.msra.gmra.mrb[0].mxu0 %vm16_vm1, %v11_v8 }
  0xde   :  { %v86_v9 = vpop.f32.mrb[0].mxu0 }
  0xdf   :  { %91 = vst.msk [vmem:[%s160_s2] sm:$0xff] %vm90_vm2, %v86_v9  ;;  %v112_v10 = vpop.f32.mrb[1].mxu0 }

</bundles_post_ra>
